<compile_context>
chip_gen: v6e
topology: v6e:2x2x1
jax: 0.10.0
libtpu: 0.0.40
codegen_flags: <defaults>
</compile_context>

<pallas_src>
import jax
import jax.numpy as jnp
import numpy as np
from jax.experimental import pallas as pl
from jax.experimental.pallas import tpu as pltpu

MODEL_FEATURES = {'v', 'l', 'c', 'd'}
MODES = ('sgdet', 'sgcls', 'predcls')


def _round_up(x, m):
    return ((x + m - 1) // m) * m


# ----------------------------------------------------------------------------
# Fused kernel: packed prior outputs + relation-candidate mask
#   packed[:, 0]   = gt_classes[:, 0] - image_offset   (float)
#   packed[:, 1:5] = gt_boxes
#   packed[:, 5]   = gt_classes[:, 1]                  (float)
#   mask[i, j]     = (img_id[i] == img_id[j]) and i != j   (int8)
# ----------------------------------------------------------------------------
def _fused_kernel(offset_ref, cls_ref, ids_row_ref, boxes_ref,
                  packed_ref, mask_ref):
    i = pl.program_id(0)          # row tile
    j = pl.program_id(1)          # col tile
    tr, tc = mask_ref.shape

    # ---- relation-candidate mask tile (bool -> int8 cast, no select) -------
    row_ids = cls_ref[:, 0:1]     # [T, 1] int32 (raw image ids, pad = -1)
    col_ids = ids_row_ref[...]    # [1, T] int32 (raw image ids, pad = -2)
    eq = row_ids == col_ids       # [T, T] bool

    @pl.when(i == j)
    def _():
        # Diagonal tiles only: zero the global diagonal.  TILE_R == TILE_C and
        # i == j, so the global diagonal is the local diagonal of this tile.
        r = jax.lax.broadcasted_iota(jnp.int32, (tr, tc), 0)
        c = jax.lax.broadcasted_iota(jnp.int32, (tr, tc), 1)
        mask_ref[...] = (eq & (r != c)).astype(jnp.int8)

    @pl.when(i != j)
    def _():
        mask_ref[...] = eq.astype(jnp.int8)

    # ---- packed prior outputs, written once per row block -------------------
    @pl.when(j == 0)
    def _():
        offset = offset_ref[0]
        packed_ref[:, 0:1] = (cls_ref[:, 0:1] - offset).astype(jnp.float32)
        packed_ref[:, 1:5] = boxes_ref[...]
        packed_ref[:, 5:6] = cls_ref[:, 1:2].astype(jnp.float32)
        packed_ref[:, 6:8] = jnp.zeros((tr, 2), jnp.float32)


def fused_prior_and_relcands(gt_classes, gt_boxes, image_offset, tile=512):
    """Single pallas_call producing ([N_pad, 8] f32 packed, [N_pad, N_pad] i8 mask)."""
    n = gt_classes.shape[0]
    t = min(tile, _round_up(n, 128))          # tile multiple of 128, <= 512
    n_pad = _round_up(n, t)
    pad = n_pad - n

    cls_pad = jnp.pad(gt_classes.astype(jnp.int32), ((0, pad), (0, 0)),
                      constant_values=-1)
    boxes_pad = jnp.pad(gt_boxes.astype(jnp.float32), ((0, pad), (0, 0)))
    # Column view of image ids.  Different pad sentinel (-2) than the row pad
    # (-1) so padded rows/cols never produce candidates -> mask is exactly zero
    # outside the valid [n, n] region.
    ids_row = jnp.pad(gt_classes[:, 0].astype(jnp.int32), (0, pad),
                      constant_values=-2).reshape(1, n_pad)
    offset_arr = jnp.reshape(jnp.asarray(image_offset, dtype=jnp.int32), (1,))

    nt = n_pad // t
    grid_spec = pltpu.PrefetchScalarGridSpec(
        num_scalar_prefetch=1,                # image_offset -> SMEM
        grid=(nt, nt),
        in_specs=[
            pl.BlockSpec((t, 2), lambda i, j, off: (i, 0)),   # gt_classes rows
            pl.BlockSpec((1, t), lambda i, j, off: (0, j)),   # image ids cols
            pl.BlockSpec((t, 4), lambda i, j, off: (i, 0)),   # gt_boxes rows
        ],
        out_specs=(
            pl.BlockSpec((t, 8), lambda i, j, off: (i, 0)),   # packed priors
            pl.BlockSpec((t, t), lambda i, j, off: (i, j)),   # candidate mask
        ),
    )

    packed, mask = pl.pallas_call(
        _fused_kernel,
        grid_spec=grid_spec,
        out_shape=(
            jax.ShapeDtypeStruct((n_pad, 8), jnp.float32),
            jax.ShapeDtypeStruct((n_pad, n_pad), jnp.int8),
        ),
        compiler_params=pltpu.CompilerParams(
            dimension_semantics=("parallel", "arbitrary")),
    )(offset_arr, cls_pad, ids_row, boxes_pad)
    return packed, mask


# ----------------------------------------------------------------------------
# RelModelBase (JAX / Pallas version) — predcls, eval path
# ----------------------------------------------------------------------------
class RelModelBase:
    def __init__(self, classes, rel_classes, mode='predcls', num_gpus=1,
                 require_overlap_det=True, active_features=None,
                 frozen_features=None):
        self.classes = classes
        self.rel_classes = rel_classes
        self.num_gpus = num_gpus
        assert mode in MODES
        assert mode == 'predcls'
        self.mode = mode
        self.require_overlap = require_overlap_det and self.mode == 'sgdet'
        features_set = self.get_flags(active_features, MODEL_FEATURES, 'vcl')
        self.has_visual = 'v' in features_set
        self.has_loc = 'l' in features_set
        self.has_class = 'c' in features_set
        self.has_depth = 'd' in features_set
        frozen_set = self.get_flags(frozen_features, MODEL_FEATURES)
        assert frozen_set.issubset(features_set)
        self.training = False

    @property
    def num_classes(self):
        return len(self.classes)

    @property
    def num_rels(self):
        return len(self.rel_classes)

    @staticmethod
    def get_flags(input_str, superset=None, default_str=''):
        flags_str = default_str if input_str in ['', None] else input_str
        flags_set = set(flags_str.strip().lower())
        if superset and (not flags_set.issubset(superset)):
            raise ValueError('Invalid flags: valid set is {}'.format(superset))
        return flags_set

    def get_prior_results(self, image_offset, gt_boxes, gt_classes, gt_rels=None):
        n = gt_classes.shape[0]
        packed, mask = fused_prior_and_relcands(gt_classes, gt_boxes, image_offset)
        packed = packed[:n]                                 # drop padded rows
        im_shifted = packed[:, 0].astype(jnp.int32)         # gt_classes[:,0]-offset
        return {
            'rois': packed[:, 0:5],
            'box_priors': packed[:, 1:5],
            'obj_labels': packed[:, 5].astype(jnp.int32),
            'im_inds': im_shifted + image_offset,           # == gt_classes[:, 0]
            'im_inds_shifted': im_shifted,
            'rel_cand_mask': mask,                          # [N_pad, N_pad] int8
        }

    def get_rel_inds(self, im_inds_shifted, rel_cand_mask, max_rels=None):
        """Eval path of get_rel_inds (predcls => no overlap filtering).

        Returns (rel_inds[K_max, 3], num_valid) — static-size, fully jittable.
        Only the first num_valid rows are meaningful (padding rows are (0,0,0)).
        """
        n = im_inds_shifted.shape[0]
        k_max = int(max_rels) if max_rels is not None else max(1, n * (n - 1))
        rows, cols = jnp.nonzero(rel_cand_mask, size=k_max, fill_value=0)
        rows = rows.astype(jnp.int32)
        cols = cols.astype(jnp.int32)
        rel_inds = jnp.stack([im_inds_shifted[rows], rows, cols], axis=1)
        num_rels = jnp.count_nonzero(rel_cand_mask).astype(jnp.int32)
        # Torch fallback emits a single (0, 0) pair when there are no
        # candidates; fill rows are already (0, 0), so just clamp the count.
        num_valid = jnp.maximum(num_rels, 1)
        return rel_inds, num_valid

    def forward(self, image_offset, gt_boxes, gt_classes, gt_rels=None):
        result = self.get_prior_results(image_offset, gt_boxes, gt_classes, gt_rels)
        rel_inds, num_rels = self.get_rel_inds(result['im_inds_shifted'],
                                               result['rel_cand_mask'])
        result['rel_inds'] = rel_inds
        result['num_rels'] = num_rels
        return result


if __name__ == "__main__":
    key = jax.random.PRNGKey(0)
    k1, k2, k3 = jax.random.split(key, 3)

    # Small problem: batch of 2 images, 8 ground-truth objects total.
    N = 8
    num_obj_classes = 16
    num_rel_classes = 8
    image_offset = 0

    img_ids = jnp.sort(jax.random.randint(k1, (N,), 0, 2)).astype(jnp.int32)
    obj_cls = jax.random.randint(k2, (N,), 1, num_obj_classes).astype(jnp.int32)
    gt_classes = jnp.stack([img_ids, obj_cls], axis=1)                 # [N, 2]
    xy = jax.random.uniform(k3, (N, 2), dtype=jnp.float32) * 100.0
    wh = jnp.abs(jax.random.normal(jax.random.fold_in(k3, 1), (N, 2))) * 30.0 + 1.0
    gt_boxes = jnp.concatenate([xy, xy + wh], axis=1).astype(jnp.float32)  # [N, 4]

    model = RelModelBase(
        classes=list(range(num_obj_classes)),
        rel_classes=list(range(num_rel_classes)),
        mode='predcls',
        active_features='vcl',
    )

    @jax.jit
    def run(boxes, classes):
        return model.forward(image_offset, boxes, classes)

    out = run(gt_boxes, gt_classes)
    jax.block_until_ready(out['rois'])
    jax.block_until_ready(out['rel_inds'])
    jax.block_until_ready(out['num_rels'])

    # ---- sanity checks against the reference semantics ----------------------
    img_ids_np = np.asarray(img_ids)
    assert out['rois'].shape == (N, 5)
    assert bool(jnp.allclose(out['rois'][:, 0], img_ids.astype(jnp.float32)))
    assert bool(jnp.allclose(out['rois'][:, 1:], gt_boxes))
    assert bool(jnp.all(out['obj_labels'] == obj_cls))
    assert bool(jnp.all(out['im_inds'] == img_ids))

    num = int(out['num_rels'])
    ri = np.asarray(out['rel_inds'])[:num]
    assert ri.shape[1] == 3

    # reference candidate pairs (same image, off-diagonal)
    ref_mask = (img_ids_np[:, None] == img_ids_np[None, :]) & ~np.eye(N, dtype=bool)
    ref_pairs = np.argwhere(ref_mask)
    assert num == int(ref_mask.sum())
    got = ri[np.lexsort((ri[:, 2], ri[:, 1])), 1:3]
    ref = ref_pairs[np.lexsort((ref_pairs[:, 1], ref_pairs[:, 0]))]
    assert np.array_equal(got, ref)
    # every candidate pair shares an image id, is off-diagonal, and carries the
    # (shifted) image index of its first object in column 0
    assert np.all(img_ids_np[ri[:, 1]] == img_ids_np[ri[:, 2]])
    assert np.all(ri[:, 1] != ri[:, 2])
    assert np.all(ri[:, 0] == img_ids_np[ri[:, 1]] - image_offset)

    print("KERNEL_OK")
</pallas_src>

<mosaic_0001>
module attributes {stable_mosaic.version = 11 : i64} {
  func.func private @main(%arg0: i32) attributes {dimension_semantics = [#tpu.dimension_semantics<core_parallel>], iteration_bounds = array<i64: 2>, tpu.core_type = #tpu.core_type<sc_scalar_subcore>, window_params = []} {
    return
  }
}

module attributes {stable_mosaic.version = 11 : i64} {
  func.func private @main(%arg0: i32) attributes {dimension_semantics = [#tpu.dimension_semantics<core_parallel>], iteration_bounds = array<i64: 2>, tpu.core_type = #tpu.core_type<sc_scalar_subcore>, window_params = []} {
    return
  }
}

module attributes {stable_mosaic.version = 11 : i64} {
  func.func @_fused_kernel(%arg0: i32, %arg1: i32, %arg2: memref<1xi32, #tpu.memory_space<smem>>, %arg3: memref<128x2xi32, #tpu.memory_space<vmem>>, %arg4: memref<1x128xi32, #tpu.memory_space<vmem>>, %arg5: memref<128x4xf32, #tpu.memory_space<vmem>>, %arg6: memref<128x8xf32, #tpu.memory_space<vmem>>, %arg7: memref<128x128xi8, #tpu.memory_space<vmem>>) attributes {dimension_semantics = [#tpu.dimension_semantics<parallel>, #tpu.dimension_semantics<arbitrary>], iteration_bounds = array<i64: 1, 1>, scalar_prefetch = 1 : i64, scratch_operands = 0 : i64, tpu.core_type = #tpu.core_type<tc>, window_params = [{transform_indices = @transform_0, window_bounds = array<i64: 128, 2>}, {transform_indices = @transform_1, window_bounds = array<i64: 1, 128>}, {transform_indices = @transform_2, window_bounds = array<i64: 128, 4>}, {transform_indices = @transform_3, window_bounds = array<i64: 128, 8>}, {transform_indices = @transform_4, window_bounds = array<i64: 128, 128>}]} {
    %c0 = arith.constant 0 : index
    %c0_0 = arith.constant 0 : index
    %0 = vector.load %arg3[%c0, %c0_0] : memref<128x2xi32, #tpu.memory_space<vmem>>, vector<128x1xi32>
    %c0_1 = arith.constant 0 : index
    %c0_2 = arith.constant 0 : index
    %1 = vector.load %arg4[%c0_1, %c0_2] : memref<1x128xi32, #tpu.memory_space<vmem>>, vector<1x128xi32>
    %2 = vector.broadcast %0 : vector<128x1xi32> to vector<128x128xi32>
    %3 = vector.broadcast %1 : vector<1x128xi32> to vector<128x128xi32>
    %4 = arith.cmpi eq, %2, %3 : vector<128x128xi32>
    %5 = arith.cmpi eq, %arg0, %arg1 : i32
    %6 = arith.extui %5 : i1 to i32
    %c0_i32 = arith.constant 0 : i32
    %7 = arith.cmpi ne, %6, %c0_i32 : i32
    scf.if %7 {
      %14 = tpu.iota {dimensions = array<i32: 0>} : vector<128x128xi32>
      %15 = tpu.iota {dimensions = array<i32: 1>} : vector<128x128xi32>
      %16 = arith.cmpi ne, %14, %15 : vector<128x128xi32>
      %17 = arith.andi %4, %16 : vector<128x128xi1>
      %18 = arith.extui %17 : vector<128x128xi1> to vector<128x128xi8>
      %c0_6 = arith.constant 0 : index
      %c0_7 = arith.constant 0 : index
      %19 = vector.load %arg7[%c0_6, %c0_7] : memref<128x128xi8, #tpu.memory_space<vmem>>, vector<128x128xi8>
      tpu.vector_store %arg7[%c0_6, %c0_7], %18 {strides = array<i32>} : memref<128x128xi8, #tpu.memory_space<vmem>>, vector<128x128xi8>,
    } else {
    }
    %8 = arith.cmpi ne, %arg0, %arg1 : i32
    %9 = arith.extui %8 : i1 to i32
    %c0_i32_3 = arith.constant 0 : i32
    %10 = arith.cmpi ne, %9, %c0_i32_3 : i32
    scf.if %10 {
      %14 = arith.extui %4 : vector<128x128xi1> to vector<128x128xi8>
      %c0_6 = arith.constant 0 : index
      %c0_7 = arith.constant 0 : index
      %15 = vector.load %arg7[%c0_6, %c0_7] : memref<128x128xi8, #tpu.memory_space<vmem>>, vector<128x128xi8>
      tpu.vector_store %arg7[%c0_6, %c0_7], %14 {strides = array<i32>} : memref<128x128xi8, #tpu.memory_space<vmem>>, vector<128x128xi8>,
    } else {
    }
    %c0_i32_4 = arith.constant 0 : i32
    %11 = arith.cmpi eq, %arg1, %c0_i32_4 : i32
    %12 = arith.extui %11 : i1 to i32
    %c0_i32_5 = arith.constant 0 : i32
    %13 = arith.cmpi ne, %12, %c0_i32_5 : i32
    scf.if %13 {
      %c0_6 = arith.constant 0 : index
      %14 = memref.load %arg2[%c0_6] : memref<1xi32, #tpu.memory_space<smem>>
      %c0_7 = arith.constant 0 : index
      %c0_8 = arith.constant 0 : index
      %15 = vector.load %arg3[%c0_7, %c0_8] : memref<128x2xi32, #tpu.memory_space<vmem>>, vector<128x1xi32>
      %16 = vector.broadcast %14 : i32 to vector<128x1xi32>
      %17 = arith.subi %15, %16 : vector<128x1xi32>
      %18 = arith.sitofp %17 : vector<128x1xi32> to vector<128x1xf32>
      %c0_9 = arith.constant 0 : index
      %c0_10 = arith.constant 0 : index
      %19 = vector.load %arg6[%c0_9, %c0_10] : memref<128x8xf32, #tpu.memory_space<vmem>>, vector<128x1xf32>
      tpu.vector_store %arg6[%c0_9, %c0_10], %18 {strides = array<i32>} : memref<128x8xf32, #tpu.memory_space<vmem>>, vector<128x1xf32>,
      %c0_11 = arith.constant 0 : index
      %c0_12 = arith.constant 0 : index
      %20 = vector.load %arg5[%c0_11, %c0_12] : memref<128x4xf32, #tpu.memory_space<vmem>>, vector<128x4xf32>
      %c0_13 = arith.constant 0 : index
      %c1 = arith.constant 1 : index
      %21 = vector.load %arg6[%c0_13, %c1] : memref<128x8xf32, #tpu.memory_space<vmem>>, vector<128x4xf32>
      tpu.vector_store %arg6[%c0_13, %c1], %20 {strides = array<i32>} : memref<128x8xf32, #tpu.memory_space<vmem>>, vector<128x4xf32>,
      %c0_14 = arith.constant 0 : index
      %c1_15 = arith.constant 1 : index
      %22 = vector.load %arg3[%c0_14, %c1_15] : memref<128x2xi32, #tpu.memory_space<vmem>>, vector<128x1xi32>
      %23 = arith.sitofp %22 : vector<128x1xi32> to vector<128x1xf32>
      %c0_16 = arith.constant 0 : index
      %c5 = arith.constant 5 : index
      %24 = vector.load %arg6[%c0_16, %c5] : memref<128x8xf32, #tpu.memory_space<vmem>>, vector<128x1xf32>
      tpu.vector_store %arg6[%c0_16, %c5], %23 {strides = array<i32>} : memref<128x8xf32, #tpu.memory_space<vmem>>, vector<128x1xf32>,
      %cst = arith.constant 0.000000e+00 : f32
      %25 = vector.broadcast %cst : f32 to vector<128x2xf32>
      %c0_17 = arith.constant 0 : index
      %c6 = arith.constant 6 : index
      %26 = vector.load %arg6[%c0_17, %c6] : memref<128x8xf32, #tpu.memory_space<vmem>>, vector<128x2xf32>
      tpu.vector_store %arg6[%c0_17, %c6], %25 {strides = array<i32>} : memref<128x8xf32, #tpu.memory_space<vmem>>, vector<128x2xf32>,
    } else {
    }
    return
  }
  func.func @transform_0(%arg0: i32, %arg1: i32, %arg2: memref<1xi32, #tpu.memory_space<smem>>) -> (i32, i32) {
    %c0_i32 = arith.constant 0 : i32
    %c0_i32_0 = arith.constant 0 : i32
    return %arg0, %c0_i32 : i32, i32
  }
  func.func @transform_1(%arg0: i32, %arg1: i32, %arg2: memref<1xi32, #tpu.memory_space<smem>>) -> (i32, i32) {
    %c0_i32 = arith.constant 0 : i32
    %c0_i32_0 = arith.constant 0 : i32
    return %c0_i32, %arg1 : i32, i32
  }
  func.func @transform_2(%arg0: i32, %arg1: i32, %arg2: memref<1xi32, #tpu.memory_space<smem>>) -> (i32, i32) {
    %c0_i32 = arith.constant 0 : i32
    %c0_i32_0 = arith.constant 0 : i32
    return %arg0, %c0_i32 : i32, i32
  }
  func.func @transform_3(%arg0: i32, %arg1: i32, %arg2: memref<1xi32, #tpu.memory_space<smem>>) -> (i32, i32) {
    %c0_i32 = arith.constant 0 : i32
    %c0_i32_0 = arith.constant 0 : i32
    return %arg0, %c0_i32 : i32, i32
  }
  func.func @transform_4(%arg0: i32, %arg1: i32, %arg2: memref<1xi32, #tpu.memory_space<smem>>) -> (i32, i32) {
    %c0_i32 = arith.constant 0 : i32
    return %arg0, %arg1 : i32, i32
  }
}

</mosaic_0001>

<bundles_post_ra>
// kernel: run.1
= control target key start
LH: loop header
LB: loop body
LE: loop exit
PB: predicated region body
PF: predicated region fallthrough
CT: control target
= control target key end

     0   :  { %v517_v0 = vmov 0   ;;  %vm258_vm0 = vcmask 7168   ;;  %s518_s8 = smov 1   ;;  %s519_s13 = smov 4   ;;  %s1143_s1 = inlined_call_operand.vmem [shape: s32[128,2], index: 1, kind: input, shape index: {}]   ;;  %s1144_s0 = inlined_call_operand.<no memory space> [shape: s32[1], index: 0, kind: input, shape index: {}]   ;;  %s1145_s3 = inlined_call_operand.vmem [shape: f32[128,4], index: 3, kind: input, shape index: {}]   ;;  %s1146_s4 = inlined_call_operand.vmem [shape: f32[128,8], index: 4, kind: output, shape index: {0}]   ;;  %s1147_s2 = inlined_call_operand.vmem [shape: s32[1,128], index: 2, kind: input, shape index: {}]   ;;  %s1148_s5 = inlined_call_operand.vmem [shape: s8[128,128], index: 5, kind: output, shape index: {1}]  }
   0x1   :  { %516 = vset.pattern.permute.xlu1 %v517_v0  ;;  %515 = vset.pattern.permute.xlu0 %v517_v0  ;;  %v556_v1 = vld [vmem:[%s1143_s1 + $0x10] sm:$0xff]  ;;  %v561_v2 = vld [vmem:[%s1143_s1] sm:$0xff]  ;;  %v568_v3 = vld [vmem:[%s1143_s1 + $0x18] sm:$0xff]  ;;  %v640_v15 = vstv %s1144_s0 }
   0x2   :  { %44 = vperm.xlu1 %516, %v556_v1   ;;  %38 = vperm.xlu0 %515, %v561_v2   ;;  %v573_v4 = vld [vmem:[%s1143_s1 + $0x8] sm:$0xff]  ;;  %v585_v6 = vld [vmem:[%s1143_s1 + $0x20] sm:$0xff]  ;;  %v592_v7 = vld [vmem:[%s1143_s1 + $0x38] sm:$0xff]  ;;  %v226_v19 = vsub.s32 %v561_v2, %v640_v15  ;;  %v229_v24 = vsub.s32 %v568_v3, %v640_v15  ;;  %v228_v25 = vsub.s32 %v556_v1, %v640_v15 }
   0x3   :  { %v580_v5 = vld [vmem:[%s1143_s1 + $0x28] sm:$0xff]  ;;  %v597_v8 = vld [vmem:[%s1143_s1 + $0x30] sm:$0xff]  ;;  %v609_v10 = vld [vmem:[%s1143_s1 + $0x40] sm:$0xff]  ;;  %v227_v18 = vsub.s32 %v573_v4, %v640_v15  ;;  %v230_v31 = vsub.s32 %v585_v6, %v640_v15  ;;  %v233_v36 = vsub.s32 %v592_v7, %v640_v15 }
   0x4   :  { %v604_v9 = vld [vmem:[%s1143_s1 + $0x48] sm:$0xff]  ;;  %v616_v11 = vld [vmem:[%s1143_s1 + $0x58] sm:$0xff]  ;;  %v621_v12 = vld [vmem:[%s1143_s1 + $0x50] sm:$0xff]  ;;  %v242_v21 = vcvt.s32.f32 %v226_v19  ;;  %v245_v26 = vcvt.s32.f32 %v229_v24  ;;  %v244_v27 = vcvt.s32.f32 %v228_v25  ;;  %v231_v30 = vsub.s32 %v580_v5, %v640_v15 }
   0x5   :  { %v628_v13 = vld [vmem:[%s1143_s1 + $0x68] sm:$0xff]  ;;  %v633_v14 = vld [vmem:[%s1143_s1 + $0x60] sm:$0xff]  ;;  %v645_v16 = vld [vmem:[%s1143_s1 + $0x78] sm:$0xff]  ;;  %v243_v20 = vcvt.s32.f32 %v227_v18  ;;  %v246_v33 = vcvt.s32.f32 %v230_v31  ;;  %v232_v37 = vsub.s32 %v597_v8, %v640_v15  ;;  %v249_v38 = vcvt.s32.f32 %v233_v36 }
   0x6   :  { %47 = vperm.xlu1 %516, %v568_v3   ;;  %41 = vperm.xlu0 %515, %v573_v4   ;;  %v650_v17 = vld [vmem:[%s1143_s1 + $0x70] sm:$0xff]  ;;  %v276_v22 = vld [vmem:[%s1145_s3 + $0x8] sm:$0xff]  ;;  %v275_v23 = vld [vmem:[%s1145_s3] sm:$0xff]  ;;  %259 = vst.msk [vmem:[%s1146_s4] sm:$0xff] %vm258_vm0, %v242_v21  ;;  %v247_v32 = vcvt.s32.f32 %v231_v30  ;;  %v235_v42 = vsub.s32 %v604_v9, %v640_v15  ;;  %v234_v43 = vsub.s32 %v609_v10, %v640_v15  ;;  %v391_v21 = vcvt.s32.f32 %v568_v3 }
   0x7   :  { %260 = vst.msk [vmem:[%s1146_s4 + $0x8] sm:$0xff] %vm258_vm0, %v243_v20  ;;  %v278_v28 = vld [vmem:[%s1145_s3 + $0x18] sm:$0xff]  ;;  %v277_v29 = vld [vmem:[%s1145_s3 + $0x10] sm:$0xff]  ;;  %262 = vst.msk [vmem:[%s1146_s4 + $0x18] sm:$0xff] %vm258_vm0, %v245_v26  ;;  %v248_v39 = vcvt.s32.f32 %v232_v37  ;;  %v237_v48 = vsub.s32 %v616_v11, %v640_v15  ;;  %v236_v49 = vsub.s32 %v621_v12, %v640_v15  ;;  %v239_v54 = vsub.s32 %v628_v13, %v640_v15 }
   0x8   :  { %261 = vst.msk [vmem:[%s1146_s4 + $0x10] sm:$0xff] %vm258_vm0, %v244_v27  ;;  %v280_v34 = vld [vmem:[%s1145_s3 + $0x28] sm:$0xff]  ;;  %v279_v35 = vld [vmem:[%s1145_s3 + $0x20] sm:$0xff]  ;;  %264 = vst.msk [vmem:[%s1146_s4 + $0x28] sm:$0xff] %vm258_vm0, %v247_v32  ;;  %v251_v44 = vcvt.s32.f32 %v235_v42  ;;  %v250_v45 = vcvt.s32.f32 %v234_v43  ;;  %v238_v55 = vsub.s32 %v633_v14, %v640_v15  ;;  %v241_v60 = vsub.s32 %v645_v16, %v640_v15 }
   0x9   :  { %263 = vst.msk [vmem:[%s1146_s4 + $0x20] sm:$0xff] %vm258_vm0, %v246_v33  ;;  %v282_v40 = vld [vmem:[%s1145_s3 + $0x38] sm:$0xff]  ;;  %v281_v41 = vld [vmem:[%s1145_s3 + $0x30] sm:$0xff]  ;;  %266 = vst.msk [vmem:[%s1146_s4 + $0x38] sm:$0xff] %vm258_vm0, %v249_v38  ;;  %v253_v50 = vcvt.s32.f32 %v237_v48  ;;  %v252_v51 = vcvt.s32.f32 %v236_v49  ;;  %v255_v56 = vcvt.s32.f32 %v239_v54  ;;  %v240_v61 = vsub.s32 %v650_v17, %v640_v15 }
   0xa   :  { %53 = vperm.xlu1 %516, %v580_v5   ;;  %50 = vperm.xlu0 %515, %v585_v6   ;;  %265 = vst.msk [vmem:[%s1146_s4 + $0x30] sm:$0xff] %vm258_vm0, %v248_v39  ;;  %v284_v46 = vld [vmem:[%s1145_s3 + $0x48] sm:$0xff]  ;;  %v283_v47 = vld [vmem:[%s1145_s3 + $0x40] sm:$0xff]  ;;  %268 = vst.msk [vmem:[%s1146_s4 + $0x48] sm:$0xff] %vm258_vm0, %v251_v44  ;;  %v254_v57 = vcvt.s32.f32 %v238_v55  ;;  %v257_v62 = vcvt.s32.f32 %v241_v60  ;;  %v389_v15 = vcvt.s32.f32 %v573_v4  ;;  %v388_v20 = vcvt.s32.f32 %v561_v2 }
   0xb   :  { %267 = vst.msk [vmem:[%s1146_s4 + $0x40] sm:$0xff] %vm258_vm0, %v250_v45  ;;  %v286_v52 = vld [vmem:[%s1145_s3 + $0x58] sm:$0xff]  ;;  %v285_v53 = vld [vmem:[%s1145_s3 + $0x50] sm:$0xff]  ;;  %270 = vst.msk [vmem:[%s1146_s4 + $0x58] sm:$0xff] %vm258_vm0, %v253_v50  ;;  %v256_v63 = vcvt.s32.f32 %v240_v61  ;;  %v392_v24 = vcvt.s32.f32 %v585_v6  ;;  %v395_v25 = vcvt.s32.f32 %v592_v7  ;;  %v394_v4 = vcvt.s32.f32 %v597_v8 }
   0xc   :  { %269 = vst.msk [vmem:[%s1146_s4 + $0x50] sm:$0xff] %vm258_vm0, %v252_v51  ;;  %v288_v58 = vld [vmem:[%s1145_s3 + $0x68] sm:$0xff]  ;;  %v287_v59 = vld [vmem:[%s1145_s3 + $0x60] sm:$0xff]  ;;  %272 = vst.msk [vmem:[%s1146_s4 + $0x68] sm:$0xff] %vm258_vm0, %v255_v56  ;;  %v397_v2 = vcvt.s32.f32 %v604_v9  ;;  %v396_v3 = vcvt.s32.f32 %v609_v10  ;;  %v401_v6 = vcvt.s32.f32 %v628_v13 }
   0xd   :  { %271 = vst.msk [vmem:[%s1146_s4 + $0x60] sm:$0xff] %vm258_vm0, %v254_v57  ;;  %v290_v18 = vld [vmem:[%s1145_s3 + $0x78] sm:$0xff]  ;;  %v289_v19 = vld [vmem:[%s1145_s3 + $0x70] sm:$0xff]  ;;  %274 = vst.msk [vmem:[%s1146_s4 + $0x78] sm:$0xff] %vm258_vm0, %v257_v62 }
   0xe   :  { %59 = vperm.xlu1 %516, %v592_v7   ;;  %56 = vperm.xlu0 %515, %v597_v8   ;;  %273 = vst.msk [vmem:[%s1146_s4 + $0x70] sm:$0xff] %vm258_vm0, %v256_v63  ;;  %v400_v7 = vcvt.s32.f32 %v633_v14  ;;  %v403_v8 = vcvt.s32.f32 %v645_v16 }
  0x12   :  { %65 = vperm.xlu1 %516, %v604_v9   ;;  %62 = vperm.xlu0 %515, %v609_v10   ;;  %v402_v9 = vcvt.s32.f32 %v650_v17  ;;  %v109_v10 = vlaneseq }
  0x14   :  { %v830_v26 = vshrl.u32 %v109_v10, 7 }
  0x16   :  { %71 = vperm.xlu1 %516, %v616_v11   ;;  %68 = vperm.xlu0 %515, %v621_v12   ;;  %v115_v31 = vadd.s32 40, %v830_v26  ;;  %v114_v33 = vadd.s32 32, %v830_v26  ;;  %v116_v37 = vadd.s32 48, %v830_v26  ;;  %v118_v44 = vadd.s32 64, %v830_v26 }
  0x17   :  { %v121_v45 = vadd.s32 88, %v830_v26  ;;  %v120_v48 = vadd.s32 80, %v830_v26  ;;  %v122_v55 = vadd.s32 96, %v830_v26  ;;  %v125_v56 = vadd.s32 120, %v830_v26 }
  0x1a   :  { %77 = vperm.xlu1 %516, %v628_v13   ;;  %74 = vperm.xlu0 %515, %v633_v14   ;;  %v838_v13 = vld [vmem:[%s1147_s2] ss:$0 sm:$0xff]  ;;  %v113_v14 = vadd.s32 24, %v830_v26 }
  0x1e   :  { %83 = vperm.xlu1 %516, %v645_v16   ;;  %80 = vperm.xlu0 %515, %v650_v17   ;;  %v111_v17 = vadd.s32 8, %v830_v26 }
  0x22   :  { %309 = vrot.lane.b32.xlu1 %v276_v22, %s518_s8  ;;  %307 = vrot.lane.b32.xlu0 %v275_v23, %s518_s8  ;;  %v390_v22 = vcvt.s32.f32 %v556_v1  ;;  %v393_v23 = vcvt.s32.f32 %v580_v5  ;;  %v399_v1 = vcvt.s32.f32 %v616_v11  ;;  %v398_v5 = vcvt.s32.f32 %v621_v12 }
  0x23   :  { %v112_v11 = vadd.s32 16, %v830_v26  ;;  %v833_v12 = vand.u32 127, %v109_v10 }
  0x25   :  { %vm130_vm1 = vcmp.ne.s32.totalorder %v112_v11, %v833_v12  ;;  %vm128_vm3 = vcmp.ne.s32.totalorder %v830_v26, %v833_v12  ;;  %vm131_vm5 = vcmp.ne.s32.totalorder %v113_v14, %v833_v12  ;;  %vm129_vm9 = vcmp.ne.s32.totalorder %v111_v17, %v833_v12 }
  0x26   :  { %313 = vrot.lane.b32.xlu1 %v278_v28, %s518_s8  ;;  %311 = vrot.lane.b32.xlu0 %v277_v29, %s518_s8  ;;  %vm133_vm14 = vcmp.ne.s32.totalorder %v115_v31, %v833_v12 }
  0x2a   :  { %317 = vrot.lane.b32.xlu1 %v280_v34, %s518_s8  ;;  %315 = vrot.lane.b32.xlu0 %v279_v35, %s518_s8  ;;  %v117_v34 = vadd.s32 56, %v830_v26 }
  0x2e   :  { %321 = vrot.lane.b32.xlu1 %v282_v40, %s518_s8  ;;  %319 = vrot.lane.b32.xlu0 %v281_v41, %s518_s8  ;;  %v119_v40 = vadd.s32 72, %v830_v26 }
  0x32   :  { %325 = vrot.lane.b32.xlu1 %v284_v46, %s518_s8  ;;  %323 = vrot.lane.b32.xlu0 %v283_v47, %s518_s8 }
  0x36   :  { %329 = vrot.lane.b32.xlu1 %v286_v52, %s518_s8  ;;  %327 = vrot.lane.b32.xlu0 %v285_v53, %s518_s8  ;;  %v123_v52 = vadd.s32 104, %v830_v26 }
  0x3a   :  { %333 = vrot.lane.b32.xlu1 %v288_v58, %s518_s8  ;;  %331 = vrot.lane.b32.xlu0 %v287_v59, %s518_s8  ;;  %v124_v59 = vadd.s32 112, %v830_v26  ;;  %v520_v26 = vmov 0.0  }
  0x3e   :  { %337 = vrot.lane.b32.xlu1 %v290_v18, %s518_s8  ;;  %335 = vrot.lane.b32.xlu0 %v289_v19, %s518_s8 }
  0x42   :  { %422 = vrot.lane.b32.xlu1 %v389_v15, %s519_s13  ;;  %420 = vrot.lane.b32.xlu0 %v388_v20, %s519_s13 }
  0x46   :  { %426 = vrot.lane.b32.xlu1 %v391_v21, %s519_s13  ;;  %424 = vrot.lane.b32.xlu0 %v390_v22, %s519_s13 }
  0x4a   :  { %430 = vrot.lane.b32.xlu1 %v393_v23, %s519_s13  ;;  %428 = vrot.lane.b32.xlu0 %v392_v24, %s519_s13 }
  0x4e   :  { %434 = vrot.lane.b32.xlu1 %v395_v25, %s519_s13  ;;  %432 = vrot.lane.b32.xlu0 %v394_v4, %s519_s13 }
  0x52   :  { %438 = vrot.lane.b32.xlu1 %v397_v2, %s519_s13  ;;  %436 = vrot.lane.b32.xlu0 %v396_v3, %s519_s13 }
  0x56   :  { %442 = vrot.lane.b32.xlu1 %v399_v1, %s519_s13  ;;  %440 = vrot.lane.b32.xlu0 %v398_v5, %s519_s13 }
  0x5a   :  { %446 = vrot.lane.b32.xlu1 %v401_v6, %s519_s13  ;;  %444 = vrot.lane.b32.xlu0 %v400_v7, %s519_s13 }
  0x5e   :  { %450 = vrot.lane.b32.xlu1 %v403_v8, %s519_s13  ;;  %448 = vrot.lane.b32.xlu0 %v402_v9, %s519_s13 }
  0x7d   :  { %v45_v27 = vpop.permute.xlu1 %44  ;;  %v39_v16 = vpop.permute.xlu0 %38 }
  0x7e   :  { %vm91_vm2 = vcmp.eq.s32.totalorder %v45_v27, %v838_v13  ;;  %vm89_vm4 = vcmp.eq.s32.totalorder %v39_v16, %v838_v13 }
  0x7f   :  { %vm848_vm6 = vmand %vm91_vm2, %vm130_vm1  ;;  %vm132_vm1 = vcmp.ne.s32.totalorder %v114_v33, %v833_v12 }
  0x80   :  { %vm853_vm7 = vmand %vm89_vm4, %vm128_vm3 }
  0x81   :  { %v48_v29 = vpop.permute.xlu1 %47  ;;  %v42_v30 = vpop.permute.xlu0 %41 }
  0x82   :  { %vm92_vm8 = vcmp.eq.s32.totalorder %v48_v29, %v838_v13  ;;  %vm90_vm10 = vcmp.eq.s32.totalorder %v42_v30, %v838_v13 }
  0x83   :  { %vm147_vm11 = vmand %vm92_vm8, %vm131_vm5  ;;  %vm135_vm5 = vcmp.ne.s32.totalorder %v117_v34, %v833_v12 }
  0x84   :  { %vm161_vm12 = vmpackc.low %vm147_vm11, %vm848_vm6 }
  0x85   :  { %vm145_vm13 = vmand %vm90_vm10, %vm129_vm9  ;;  %v54_v35 = vpop.permute.xlu1 %53  ;;  %v51_v36 = vpop.permute.xlu0 %50 }
  0x86   :  { %vm160_vm15 = vmpackc.low %vm145_vm13, %vm853_vm7  ;;  %vm94_vm0 = vcmp.eq.s32.totalorder %v54_v35, %v838_v13  ;;  %vm93_vm2 = vcmp.eq.s32.totalorder %v51_v36, %v838_v13  ;;  %vm134_vm7 = vcmp.ne.s32.totalorder %v116_v37, %v833_v12  ;;  %vm137_vm13 = vcmp.ne.s32.totalorder %v119_v40, %v833_v12 }
  0x87   :  { %vm162_vm3 = vmpackc.even %vm161_vm12, %vm160_vm15  ;;  %vm136_vm15 = vcmp.ne.s32.totalorder %v118_v44, %v833_v12 }
  0x88   :  { %v172_v38 = vsel %vm162_vm3, 16843009, %v517_v0  ;;  %vm872_vm4 = vmand %vm94_vm0, %vm133_vm14 }
  0x89   :  { %176 = vst [vmem:[%s1148_s5] sm:$0xff] %v172_v38  ;;  %vm881_vm6 = vmand %vm93_vm2, %vm132_vm1  ;;  %v60_v42 = vpop.permute.xlu1 %59  ;;  %v57_v43 = vpop.permute.xlu0 %56 }
  0x8a   :  { %vm163_vm8 = vmpackc.low %vm872_vm4, %vm881_vm6  ;;  %vm96_vm9 = vcmp.eq.s32.totalorder %v60_v42, %v838_v13  ;;  %vm95_vm10 = vcmp.eq.s32.totalorder %v57_v43, %v838_v13  ;;  %vm138_vm6 = vcmp.ne.s32.totalorder %v120_v48, %v833_v12 }
  0x8b   :  { %vm151_vm11 = vmand %vm96_vm9, %vm135_vm5  ;;  %vm139_vm5 = vcmp.ne.s32.totalorder %v121_v45, %v833_v12 }
  0x8c   :  { %vm150_vm12 = vmand %vm95_vm10, %vm134_vm7 }
  0x8d   :  { %vm164_vm14 = vmpackc.low %vm151_vm11, %vm150_vm12  ;;  %v66_v46 = vpop.permute.xlu1 %65  ;;  %v63_v47 = vpop.permute.xlu0 %62  ;;  %vm141_vm12 = vcmp.ne.s32.totalorder %v123_v52, %v833_v12 }
  0x8e   :  { %vm165_vm0 = vmpackc.even %vm164_vm14, %vm163_vm8  ;;  %vm98_vm1 = vcmp.eq.s32.totalorder %v66_v46, %v838_v13  ;;  %vm97_vm2 = vcmp.eq.s32.totalorder %v63_v47, %v838_v13  ;;  %vm140_vm14 = vcmp.ne.s32.totalorder %v122_v55, %v833_v12 }
  0x8f   :  { %v173_v49 = vsel %vm165_vm0, 16843009, %v517_v0  ;;  %vm900_vm3 = vmand %vm98_vm1, %vm137_vm13 }
  0x90   :  { %177 = vst [vmem:[%s1148_s5 + $0x8] sm:$0xff] %v173_v49  ;;  %vm907_vm4 = vmand %vm97_vm2, %vm136_vm15 }
  0x91   :  { %v72_v53 = vpop.permute.xlu1 %71  ;;  %v69_v54 = vpop.permute.xlu0 %68  ;;  %vm166_vm7 = vmpackc.low %vm900_vm3, %vm907_vm4  ;;  %vm143_vm4 = vcmp.ne.s32.totalorder %v125_v56, %v833_v12 }
  0x92   :  { %vm100_vm8 = vcmp.eq.s32.totalorder %v72_v53, %v838_v13  ;;  %vm99_vm9 = vcmp.eq.s32.totalorder %v69_v54, %v838_v13 }
  0x93   :  { %vm155_vm10 = vmand %vm100_vm8, %vm139_vm5  ;;  %vm142_vm5 = vcmp.ne.s32.totalorder %v124_v59, %v833_v12 }
  0x94   :  { %vm154_vm11 = vmand %vm99_vm9, %vm138_vm6 }
  0x95   :  { %vm167_vm13 = vmpackc.low %vm155_vm10, %vm154_vm11  ;;  %v78_v57 = vpop.permute.xlu1 %77  ;;  %v75_v58 = vpop.permute.xlu0 %74  ;;  %vm355_vm10 = vcmask 39944  }
  0x96   :  { %vm168_vm15 = vmpackc.even %vm167_vm13, %vm166_vm7  ;;  %vm102_vm0 = vcmp.eq.s32.totalorder %v78_v57, %v838_v13  ;;  %vm101_vm1 = vcmp.eq.s32.totalorder %v75_v58, %v838_v13 }
  0x97   :  { %v174_v60 = vsel %vm168_vm15, 16843009, %v517_v0  ;;  %vm928_vm2 = vmand %vm102_vm0, %vm141_vm12  ;;  %vm485_vm15 = vcmask 64560  }
  0x98   :  { %178 = vst [vmem:[%s1148_s5 + $0x10] sm:$0xff] %v174_v60  ;;  %vm935_vm3 = vmand %vm101_vm1, %vm140_vm14  ;;  %vm468_vm14 = vcmask 48168  }
  0x99   :  { %v84_v63 = vpop.permute.xlu1 %83  ;;  %v81_v18 = vpop.permute.xlu0 %80  ;;  %vm169_vm6 = vmpackc.low %vm928_vm2, %vm935_vm3 }
  0x9a   :  { %vm104_vm7 = vcmp.eq.s32.totalorder %v84_v63, %v838_v13  ;;  %vm103_vm8 = vcmp.eq.s32.totalorder %v81_v18, %v838_v13 }
  0x9b   :  { %vm159_vm9 = vmand %vm104_vm7, %vm143_vm4 }
  0x9c   :  { %vm158_vm11 = vmand %vm103_vm8, %vm142_vm5 }
  0x9d   :  { %vm170_vm12 = vmpackc.low %vm159_vm9, %vm158_vm11  ;;  %v310_v19 = vpop.permute.xlu1 %309  ;;  %v308_v15 = vpop.permute.xlu0 %307 }
  0x9e   :  { %vm171_vm13 = vmpackc.even %vm170_vm12, %vm169_vm6  ;;  %357 = vst.msk [vmem:[%s1146_s4 + $0x8] sm:$0xff] %vm355_vm10, %v310_v19 }
  0x9f   :  { %356 = vst.msk [vmem:[%s1146_s4] sm:$0xff] %vm355_vm10, %v308_v15  ;;  %v175_v20 = vsel %vm171_vm13, 16843009, %v517_v0 }
  0xa0   :  { %179 = vst [vmem:[%s1148_s5 + $0x18] sm:$0xff] %v175_v20 }
  0xa1   :  { %v314_v21 = vpop.permute.xlu1 %313  ;;  %v312_v22 = vpop.permute.xlu0 %311 }
  0xa2   :  { %359 = vst.msk [vmem:[%s1146_s4 + $0x18] sm:$0xff] %vm355_vm10, %v314_v21  ;;  %358 = vst.msk [vmem:[%s1146_s4 + $0x10] sm:$0xff] %vm355_vm10, %v312_v22 }
  0xa5   :  { %v318_v23 = vpop.permute.xlu1 %317  ;;  %v316_v24 = vpop.permute.xlu0 %315 }
  0xa6   :  { %361 = vst.msk [vmem:[%s1146_s4 + $0x28] sm:$0xff] %vm355_vm10, %v318_v23  ;;  %360 = vst.msk [vmem:[%s1146_s4 + $0x20] sm:$0xff] %vm355_vm10, %v316_v24 }
  0xa9   :  { %v322_v0 = vpop.permute.xlu1 %321  ;;  %v320_v25 = vpop.permute.xlu0 %319 }
  0xaa   :  { %363 = vst.msk [vmem:[%s1146_s4 + $0x38] sm:$0xff] %vm355_vm10, %v322_v0  ;;  %362 = vst.msk [vmem:[%s1146_s4 + $0x30] sm:$0xff] %vm355_vm10, %v320_v25 }
  0xad   :  { %v326_v4 = vpop.permute.xlu1 %325  ;;  %v324_v2 = vpop.permute.xlu0 %323 }
  0xae   :  { %365 = vst.msk [vmem:[%s1146_s4 + $0x48] sm:$0xff] %vm355_vm10, %v326_v4  ;;  %364 = vst.msk [vmem:[%s1146_s4 + $0x40] sm:$0xff] %vm355_vm10, %v324_v2 }
  0xb1   :  { %v330_v3 = vpop.permute.xlu1 %329  ;;  %v328_v1 = vpop.permute.xlu0 %327 }
  0xb2   :  { %367 = vst.msk [vmem:[%s1146_s4 + $0x58] sm:$0xff] %vm355_vm10, %v330_v3  ;;  %366 = vst.msk [vmem:[%s1146_s4 + $0x50] sm:$0xff] %vm355_vm10, %v328_v1 }
  0xb5   :  { %v334_v5 = vpop.permute.xlu1 %333  ;;  %v332_v6 = vpop.permute.xlu0 %331 }
  0xb6   :  { %369 = vst.msk [vmem:[%s1146_s4 + $0x68] sm:$0xff] %vm355_vm10, %v334_v5  ;;  %368 = vst.msk [vmem:[%s1146_s4 + $0x60] sm:$0xff] %vm355_vm10, %v332_v6 }
  0xb9   :  { %v338_v7 = vpop.permute.xlu1 %337  ;;  %v336_v8 = vpop.permute.xlu0 %335 }
  0xba   :  { %371 = vst.msk [vmem:[%s1146_s4 + $0x78] sm:$0xff] %vm355_vm10, %v338_v7  ;;  %370 = vst.msk [vmem:[%s1146_s4 + $0x70] sm:$0xff] %vm355_vm10, %v336_v8 }
  0xbd   :  { %v423_v9 = vpop.permute.xlu1 %422  ;;  %v421_v10 = vpop.permute.xlu0 %420 }
  0xbe   :  { %470 = vst.msk [vmem:[%s1146_s4 + $0x8] sm:$0xff] %vm468_vm14, %v423_v9  ;;  %469 = vst.msk [vmem:[%s1146_s4] sm:$0xff] %vm468_vm14, %v421_v10 }
  0xbf   :  { %487 = vst.msk [vmem:[%s1146_s4 + $0x8] sm:$0xff] %vm485_vm15, %v520_v26  ;;  %486 = vst.msk [vmem:[%s1146_s4] sm:$0xff] %vm485_vm15, %v520_v26 }
  0xc1   :  { %v427_v11 = vpop.permute.xlu1 %426  ;;  %v425_v12 = vpop.permute.xlu0 %424 }
  0xc2   :  { %472 = vst.msk [vmem:[%s1146_s4 + $0x18] sm:$0xff] %vm468_vm14, %v427_v11  ;;  %471 = vst.msk [vmem:[%s1146_s4 + $0x10] sm:$0xff] %vm468_vm14, %v425_v12 }
  0xc3   :  { %489 = vst.msk [vmem:[%s1146_s4 + $0x18] sm:$0xff] %vm485_vm15, %v520_v26  ;;  %488 = vst.msk [vmem:[%s1146_s4 + $0x10] sm:$0xff] %vm485_vm15, %v520_v26 }
  0xc5   :  { %v431_v13 = vpop.permute.xlu1 %430  ;;  %v429_v14 = vpop.permute.xlu0 %428 }
  0xc6   :  { %474 = vst.msk [vmem:[%s1146_s4 + $0x28] sm:$0xff] %vm468_vm14, %v431_v13  ;;  %473 = vst.msk [vmem:[%s1146_s4 + $0x20] sm:$0xff] %vm468_vm14, %v429_v14 }
  0xc7   :  { %491 = vst.msk [vmem:[%s1146_s4 + $0x28] sm:$0xff] %vm485_vm15, %v520_v26  ;;  %490 = vst.msk [vmem:[%s1146_s4 + $0x20] sm:$0xff] %vm485_vm15, %v520_v26 }
  0xc9   :  { %v435_v27 = vpop.permute.xlu1 %434  ;;  %v433_v16 = vpop.permute.xlu0 %432 }
  0xca   :  { %476 = vst.msk [vmem:[%s1146_s4 + $0x38] sm:$0xff] %vm468_vm14, %v435_v27  ;;  %475 = vst.msk [vmem:[%s1146_s4 + $0x30] sm:$0xff] %vm468_vm14, %v433_v16 }
  0xcb   :  { %493 = vst.msk [vmem:[%s1146_s4 + $0x38] sm:$0xff] %vm485_vm15, %v520_v26  ;;  %492 = vst.msk [vmem:[%s1146_s4 + $0x30] sm:$0xff] %vm485_vm15, %v520_v26 }
  0xcd   :  { %v439_v17 = vpop.permute.xlu1 %438  ;;  %v437_v28 = vpop.permute.xlu0 %436 }
  0xce   :  { %478 = vst.msk [vmem:[%s1146_s4 + $0x48] sm:$0xff] %vm468_vm14, %v439_v17  ;;  %477 = vst.msk [vmem:[%s1146_s4 + $0x40] sm:$0xff] %vm468_vm14, %v437_v28 }
  0xcf   :  { %495 = vst.msk [vmem:[%s1146_s4 + $0x48] sm:$0xff] %vm485_vm15, %v520_v26  ;;  %494 = vst.msk [vmem:[%s1146_s4 + $0x40] sm:$0xff] %vm485_vm15, %v520_v26 }
  0xd1   :  { %v443_v29 = vpop.permute.xlu1 %442  ;;  %v441_v30 = vpop.permute.xlu0 %440 }
  0xd2   :  { %480 = vst.msk [vmem:[%s1146_s4 + $0x58] sm:$0xff] %vm468_vm14, %v443_v29  ;;  %479 = vst.msk [vmem:[%s1146_s4 + $0x50] sm:$0xff] %vm468_vm14, %v441_v30 }
  0xd3   :  { %497 = vst.msk [vmem:[%s1146_s4 + $0x58] sm:$0xff] %vm485_vm15, %v520_v26  ;;  %496 = vst.msk [vmem:[%s1146_s4 + $0x50] sm:$0xff] %vm485_vm15, %v520_v26 }
  0xd5   :  { %v447_v31 = vpop.permute.xlu1 %446  ;;  %v445_v32 = vpop.permute.xlu0 %444 }
  0xd6   :  { %482 = vst.msk [vmem:[%s1146_s4 + $0x68] sm:$0xff] %vm468_vm14, %v447_v31  ;;  %481 = vst.msk [vmem:[%s1146_s4 + $0x60] sm:$0xff] %vm468_vm14, %v445_v32 }
  0xd7   :  { %499 = vst.msk [vmem:[%s1146_s4 + $0x68] sm:$0xff] %vm485_vm15, %v520_v26  ;;  %498 = vst.msk [vmem:[%s1146_s4 + $0x60] sm:$0xff] %vm485_vm15, %v520_v26 }
  0xd9   :  { %v451_v33 = vpop.permute.xlu1 %450  ;;  %v449_v34 = vpop.permute.xlu0 %448 }
  0xda   :  { %484 = vst.msk [vmem:[%s1146_s4 + $0x78] sm:$0xff] %vm468_vm14, %v451_v33  ;;  %483 = vst.msk [vmem:[%s1146_s4 + $0x70] sm:$0xff] %vm468_vm14, %v449_v34 }
  0xdb   :  { %501 = vst.msk [vmem:[%s1146_s4 + $0x78] sm:$0xff] %vm485_vm15, %v520_v26  ;;  %500 = vst.msk [vmem:[%s1146_s4 + $0x70] sm:$0xff] %vm485_vm15, %v520_v26 }

</bundles_post_ra>
